<compile_context>
chip_gen: v5e
topology: v5e:2x2
jax: 0.10.0
libtpu: 0.0.40
codegen_flags: <defaults>
</compile_context>

<pallas_src>
import jax
import jax.numpy as jnp
import numpy as np
from jax.experimental import pallas as pl
from jax.experimental.pallas import tpu as pltpu


def _round_up(a, b):
    return (a + b - 1) // b * b


def complex_conv2d(x, w_real, w_imag, stride=1, padding=0, block_h=None,
                   compute_dtype=None):
    """ComplexConv.forward (rank=2, groups=1, dilation=1, bias=False).

    x:      (N, Cin, H, W, 2)   NCHW + trailing complex dim (matches the PyTorch module)
    w_real: (Cout, Cin, KH, KW) real_conv.weight  (a)
    w_imag: (Cout, Cin, KH, KW) imag_conv.weight  (b)
    returns (N, Cout, Ho, Wo, 2)
    """
    # TODO(synk): rank 1/3, transposed conv, groups>1 and dilation>1 are not implemented
    # in this Pallas path (the module defaults used here are rank=2, groups=1, dilation=1).
    N, Cin, H, W, two = x.shape
    assert two == 2
    Cout, Cin_w, KH, KW = w_real.shape
    assert Cin_w == Cin and w_imag.shape == w_real.shape

    Ho = (H + 2 * padding - KH) // stride + 1
    Wo = (W + 2 * padding - KW) // stride + 1
    assert Ho > 0 and Wo > 0

    C = 2 * Cin                    # packed input channels: [real Cin | imag Cin]
    K = KH * KW * C                # contraction size of the fused matmul
    C2 = 2 * Cout                  # packed output channels: [out_r Cout | out_i Cout]
    C2P = _round_up(C2, 128)       # lane-dense padded output channels

    if block_h is None:
        block_h = max(8, min(128, _round_up(Ho, 8)))
    TH = block_h                   # output rows computed per grid step
    n_h = pl.cdiv(Ho, TH)
    Ho_up = n_h * TH               # padded output rows (garbage rows sliced off)
    WPO = _round_up(Wo, 8)         # padded output cols (sublane-aligned reshape/store)

    # Input allocation large enough that every shifted (kh, kw) window read stays
    # in-bounds, including for the padded garbage output rows/cols.
    H_alloc = max((Ho_up - 1) * stride + KH, H + 2 * padding)
    W_alloc = max((WPO - 1) * stride + KW, W + 2 * padding)

    # ---- wrapper-side layout: one transpose in, one transpose out ----
    # (N, Cin, H, W, 2) -> (N, H, W, 2, Cin) -> (N, H, W, 2*Cin), then zero-pad.
    xp = jnp.transpose(x, (0, 2, 3, 4, 1)).reshape(N, H, W, C)
    xp = jnp.pad(xp, ((0, 0),
                      (padding, H_alloc - H - padding),
                      (padding, W_alloc - W - padding),
                      (0, 0)))

    # Fused complex weight. For packed input channel (ri, c) at tap (kh, kw):
    #   out_r = x*a - y*b ,  out_i = x*b + y*a
    # K ordering = ((kh*KW + kw)*2 + ri)*Cin + c, matching the in-kernel concat order.
    a = jnp.transpose(w_real, (2, 3, 1, 0))            # (KH, KW, Cin, Cout)
    b = jnp.transpose(w_imag, (2, 3, 1, 0))
    w_r_cols = jnp.stack([a, -b], axis=2)              # columns 0..Cout-1  -> out_r
    w_i_cols = jnp.stack([b, a], axis=2)               # columns Cout..2Cout-1 -> out_i
    wf = jnp.concatenate([w_r_cols, w_i_cols], axis=-1).reshape(K, C2)
    wf = jnp.pad(wf, ((0, 0), (0, C2P - C2)))

    if compute_dtype is not None:                      # e.g. jnp.bfloat16 on v6e/v7x
        xp = xp.astype(compute_dtype)                  # (changes numerics slightly)
        wf = wf.astype(compute_dtype)
    else:
        wf = wf.astype(xp.dtype)

    out_dtype = x.dtype

    def kernel(x_ref, w_ref, o_ref):
        r = pl.program_id(1)
        row0 = pl.multiple_of(r * TH, TH)
        # Build the (TH, WPO, K) patch block from shifted window reads of the
        # VMEM-resident image (this replaces the HBM im2col).
        cols = []
        for kh in range(KH):
            for kw in range(KW):
                if stride == 1:
                    piece = x_ref[0, pl.ds(row0 + kh, TH), pl.ds(kw, WPO), :]
                else:
                    piece = x_ref[0,
                                  pl.ds(row0 * stride + kh, TH, stride=stride),
                                  pl.ds(kw, WPO, stride=stride), :]
                cols.append(piece)
        patches = jnp.concatenate(cols, axis=-1)       # (TH, WPO, K)
        lhs = patches.reshape(TH * WPO, K)             # WPO % 8 == 0 -> trivial reshape
        # Single fused MXU matmul; columns are already [out_r | out_i | zero pad].
        acc = jnp.dot(lhs, w_ref[...], preferred_element_type=jnp.float32)
        o_ref[0] = acc.reshape(TH, WPO, C2P).astype(o_ref.dtype)

    out = pl.pallas_call(
        kernel,
        out_shape=jax.ShapeDtypeStruct((N, Ho_up, WPO, C2P), out_dtype),
        grid=(N, n_h),
        in_specs=[
            # Whole packed image per batch element; same block index across the
            # row-tile axis -> stays resident in VMEM (fetched once per n).
            # TODO(synk): for very large images switch to manual halo DMA per row tile.
            pl.BlockSpec((1, H_alloc, W_alloc, C), lambda n, r: (n, 0, 0, 0)),
            # Fused weight, resident across the whole grid.
            pl.BlockSpec((K, C2P), lambda n, r: (0, 0)),
        ],
        out_specs=pl.BlockSpec((1, TH, WPO, C2P), lambda n, r: (n, r, 0, 0)),
        compiler_params=pltpu.CompilerParams(
            dimension_semantics=("parallel", "parallel"),
            # Fits comfortably inside the scoped default on v5e/v6e and v7x's 64 MiB VMEM.
            vmem_limit_bytes=32 * 1024 * 1024),
    )(xp, wf)

    # Strip padding, unpack [out_r | out_i], and return the module's layout.
    out = out[:, :Ho, :Wo, :C2].reshape(N, Ho, Wo, 2, Cout)
    return jnp.transpose(out, (0, 4, 1, 2, 3))         # (N, Cout, Ho, Wo, 2)


def _ref_complex_conv2d(x, w_real, w_imag, stride=1, padding=0):
    """Pure-JAX reference (mirrors the PyTorch forward exactly)."""
    def conv(inp, w):
        return jax.lax.conv_general_dilated(
            inp, w, (stride, stride), [(padding, padding)] * 2,
            dimension_numbers=("NCHW", "OIHW", "NCHW"))
    x_r, x_i = x[..., 0], x[..., 1]
    o_r = conv(x_r, w_real) - conv(x_i, w_imag)
    o_i = conv(x_i, w_real) + conv(x_r, w_imag)
    return jnp.stack([o_r, o_i], axis=-1)


if __name__ == "__main__":
    # Module config (rank=2): in_channels=4, out_channels=8, kernel_size=3,
    # stride=1, padding=0, dilation=1, groups=1, bias forced off in __init__.
    N, Cin, Cout, H, W, KH, KW = 2, 4, 8, 16, 16, 3, 3
    stride, padding = 1, 0

    key = jax.random.PRNGKey(0)
    kx, kr, ki = jax.random.split(key, 3)
    x = jax.random.normal(kx, (N, Cin, H, W, 2), dtype=jnp.float32)
    fan_in = Cin * KH * KW
    bound = 1.0 / np.sqrt(fan_in)
    w_real = jax.random.uniform(kr, (Cout, Cin, KH, KW), jnp.float32, -bound, bound)
    w_imag = jax.random.uniform(ki, (Cout, Cin, KH, KW), jnp.float32, -bound, bound)

    conv = jax.jit(lambda xx, wr, wi: complex_conv2d(
        xx, wr, wi, stride=stride, padding=padding, block_h=8))
    out = jax.block_until_ready(conv(x, w_real, w_imag))

    ref = jax.block_until_ready(
        _ref_complex_conv2d(x, w_real, w_imag, stride=stride, padding=padding))
    np.testing.assert_allclose(np.asarray(out), np.asarray(ref),
                               rtol=1e-5, atol=1e-5)
    assert out.shape == (N, Cout, H - KH + 1, W - KW + 1, 2)
    print("KERNEL_OK")
</pallas_src>

<mosaic_0001>
module attributes {stable_mosaic.version = 11 : i64} {
  func.func @kernel(%arg0: i32, %arg1: i32, %arg2: memref<1x18x18x8xf32, #tpu.memory_space<vmem>>, %arg3: memref<72x128xf32, #tpu.memory_space<vmem>>, %arg4: memref<1x8x16x128xf32, #tpu.memory_space<vmem>>) attributes {dimension_semantics = [#tpu.dimension_semantics<parallel>, #tpu.dimension_semantics<parallel>], iteration_bounds = array<i64: 2, 2>, scalar_prefetch = 0 : i64, scratch_operands = 0 : i64, tpu.core_type = #tpu.core_type<tc>, window_params = [{transform_indices = @transform_0, window_bounds = array<i64: 1, 18, 18, 8>}, {pipeline_mode = #tpu.pipeline_mode<synchronous>, transform_indices = @transform_1, window_bounds = array<i64: 72, 128>}, {transform_indices = @transform_2, window_bounds = array<i64: 1, 8, 16, 128>}]} {
    %c8_i32 = arith.constant 8 : i32
    %0 = arith.muli %arg1, %c8_i32 : i32
    %1 = tpu.assume_multiple %0, 8 : i32
    %c0_i32 = arith.constant 0 : i32
    %2 = arith.addi %1, %c0_i32 : i32
    %c0 = arith.constant 0 : index
    %3 = arith.index_cast %2 : i32 to index
    %c0_0 = arith.constant 0 : index
    %c0_1 = arith.constant 0 : index
    %4 = vector.load %arg2[%c0, %3, %c0_0, %c0_1] : memref<1x18x18x8xf32, #tpu.memory_space<vmem>>, vector<1x8x16x8xf32>
    %5 = vector.shape_cast %4 : vector<1x8x16x8xf32> to vector<8x16x8xf32>
    %c0_i32_2 = arith.constant 0 : i32
    %6 = arith.addi %1, %c0_i32_2 : i32
    %c0_3 = arith.constant 0 : index
    %7 = arith.index_cast %6 : i32 to index
    %c1 = arith.constant 1 : index
    %c0_4 = arith.constant 0 : index
    %8 = vector.load %arg2[%c0_3, %7, %c1, %c0_4] : memref<1x18x18x8xf32, #tpu.memory_space<vmem>>, vector<1x8x16x8xf32>
    %9 = vector.shape_cast %8 : vector<1x8x16x8xf32> to vector<8x16x8xf32>
    %c0_i32_5 = arith.constant 0 : i32
    %10 = arith.addi %1, %c0_i32_5 : i32
    %c0_6 = arith.constant 0 : index
    %11 = arith.index_cast %10 : i32 to index
    %c2 = arith.constant 2 : index
    %c0_7 = arith.constant 0 : index
    %12 = vector.load %arg2[%c0_6, %11, %c2, %c0_7] : memref<1x18x18x8xf32, #tpu.memory_space<vmem>>, vector<1x8x16x8xf32>
    %13 = vector.shape_cast %12 : vector<1x8x16x8xf32> to vector<8x16x8xf32>
    %c1_i32 = arith.constant 1 : i32
    %14 = arith.addi %1, %c1_i32 : i32
    %c0_8 = arith.constant 0 : index
    %15 = arith.index_cast %14 : i32 to index
    %c0_9 = arith.constant 0 : index
    %c0_10 = arith.constant 0 : index
    %16 = vector.load %arg2[%c0_8, %15, %c0_9, %c0_10] : memref<1x18x18x8xf32, #tpu.memory_space<vmem>>, vector<1x8x16x8xf32>
    %17 = vector.shape_cast %16 : vector<1x8x16x8xf32> to vector<8x16x8xf32>
    %c1_i32_11 = arith.constant 1 : i32
    %18 = arith.addi %1, %c1_i32_11 : i32
    %c0_12 = arith.constant 0 : index
    %19 = arith.index_cast %18 : i32 to index
    %c1_13 = arith.constant 1 : index
    %c0_14 = arith.constant 0 : index
    %20 = vector.load %arg2[%c0_12, %19, %c1_13, %c0_14] : memref<1x18x18x8xf32, #tpu.memory_space<vmem>>, vector<1x8x16x8xf32>
    %21 = vector.shape_cast %20 : vector<1x8x16x8xf32> to vector<8x16x8xf32>
    %c1_i32_15 = arith.constant 1 : i32
    %22 = arith.addi %1, %c1_i32_15 : i32
    %c0_16 = arith.constant 0 : index
    %23 = arith.index_cast %22 : i32 to index
    %c2_17 = arith.constant 2 : index
    %c0_18 = arith.constant 0 : index
    %24 = vector.load %arg2[%c0_16, %23, %c2_17, %c0_18] : memref<1x18x18x8xf32, #tpu.memory_space<vmem>>, vector<1x8x16x8xf32>
    %25 = vector.shape_cast %24 : vector<1x8x16x8xf32> to vector<8x16x8xf32>
    %c2_i32 = arith.constant 2 : i32
    %26 = arith.addi %1, %c2_i32 : i32
    %c0_19 = arith.constant 0 : index
    %27 = arith.index_cast %26 : i32 to index
    %c0_20 = arith.constant 0 : index
    %c0_21 = arith.constant 0 : index
    %28 = vector.load %arg2[%c0_19, %27, %c0_20, %c0_21] : memref<1x18x18x8xf32, #tpu.memory_space<vmem>>, vector<1x8x16x8xf32>
    %29 = vector.shape_cast %28 : vector<1x8x16x8xf32> to vector<8x16x8xf32>
    %c2_i32_22 = arith.constant 2 : i32
    %30 = arith.addi %1, %c2_i32_22 : i32
    %c0_23 = arith.constant 0 : index
    %31 = arith.index_cast %30 : i32 to index
    %c1_24 = arith.constant 1 : index
    %c0_25 = arith.constant 0 : index
    %32 = vector.load %arg2[%c0_23, %31, %c1_24, %c0_25] : memref<1x18x18x8xf32, #tpu.memory_space<vmem>>, vector<1x8x16x8xf32>
    %33 = vector.shape_cast %32 : vector<1x8x16x8xf32> to vector<8x16x8xf32>
    %c2_i32_26 = arith.constant 2 : i32
    %34 = arith.addi %1, %c2_i32_26 : i32
    %c0_27 = arith.constant 0 : index
    %35 = arith.index_cast %34 : i32 to index
    %c2_28 = arith.constant 2 : index
    %c0_29 = arith.constant 0 : index
    %36 = vector.load %arg2[%c0_27, %35, %c2_28, %c0_29] : memref<1x18x18x8xf32, #tpu.memory_space<vmem>>, vector<1x8x16x8xf32>
    %37 = vector.shape_cast %36 : vector<1x8x16x8xf32> to vector<8x16x8xf32>
    %38 = tpu.concatenate %5, %9, %13, %17, %21, %25, %29, %33, %37 in 2 : vector<8x16x8xf32>, vector<8x16x8xf32>, vector<8x16x8xf32>, vector<8x16x8xf32>, vector<8x16x8xf32>, vector<8x16x8xf32>, vector<8x16x8xf32>, vector<8x16x8xf32>, vector<8x16x8xf32> -> vector<8x16x72xf32>
    %39 = vector.shape_cast %38 : vector<8x16x72xf32> to vector<128x72xf32>
    %c0_30 = arith.constant 0 : index
    %c0_31 = arith.constant 0 : index
    %40 = vector.load %arg3[%c0_30, %c0_31] : memref<72x128xf32, #tpu.memory_space<vmem>>, vector<72x128xf32>
    %cst = arith.constant dense<0.000000e+00> : vector<128x128xf32>
    %41 = tpu.matmul %39, %40, %cst {dimension_numbers = #tpu.dot_dimension_numbers<[1], [0], [0], [1], [0, 0, 1, 1], [], []>} : vector<128x72xf32>, vector<72x128xf32>, vector<128x128xf32> -> vector<128x128xf32>
    %42 = vector.shape_cast %41 : vector<128x128xf32> to vector<8x16x128xf32>
    %c0_32 = arith.constant 0 : index
    %c0_33 = arith.constant 0 : index
    %c0_34 = arith.constant 0 : index
    %c0_35 = arith.constant 0 : index
    %43 = vector.load %arg4[%c0_32, %c0_33, %c0_34, %c0_35] : memref<1x8x16x128xf32, #tpu.memory_space<vmem>>, vector<1x8x16x128xf32>
    %44 = vector.shape_cast %43 : vector<1x8x16x128xf32> to vector<8x16x128xf32>
    %45 = vector.shape_cast %42 : vector<8x16x128xf32> to vector<1x8x16x128xf32>
    tpu.vector_store %arg4[%c0_32, %c0_33, %c0_34, %c0_35], %45 {strides = array<i32>} : memref<1x8x16x128xf32, #tpu.memory_space<vmem>>, vector<1x8x16x128xf32>,
    return
  }
  func.func @transform_0(%arg0: i32, %arg1: i32) -> (i32, i32, i32, i32) {
    %c0_i32 = arith.constant 0 : i32
    %c0_i32_0 = arith.constant 0 : i32
    %c0_i32_1 = arith.constant 0 : i32
    %c0_i32_2 = arith.constant 0 : i32
    return %arg0, %c0_i32, %c0_i32_0, %c0_i32_1 : i32, i32, i32, i32
  }
  func.func @transform_1(%arg0: i32, %arg1: i32) -> (i32, i32) {
    %c0_i32 = arith.constant 0 : i32
    %c0_i32_0 = arith.constant 0 : i32
    %c0_i32_1 = arith.constant 0 : i32
    return %c0_i32, %c0_i32_0 : i32, i32
  }
  func.func @transform_2(%arg0: i32, %arg1: i32) -> (i32, i32, i32, i32) {
    %c0_i32 = arith.constant 0 : i32
    %c0_i32_0 = arith.constant 0 : i32
    %c0_i32_1 = arith.constant 0 : i32
    return %arg0, %arg1, %c0_i32, %c0_i32_0 : i32, i32, i32, i32
  }
}

</mosaic_0001>

<bundles_post_ra>
// kernel: _lambda_.1
= control target key start
LH: loop header
LB: loop body
LE: loop exit
PB: predicated region body
PF: predicated region fallthrough
CT: control target
= control target key end

     0   :  { %s1478_s9 = smov 0   ;;  %s1480_s10 = smov 0   ;;  %s2243_s0 = inlined_call_operand.vmem [shape: f32[2,18,18,8], index: 0, kind: input, shape index: {}]   ;;  %s2244_s1 = inlined_call_operand.vmem [shape: f32[72,128], index: 1, kind: input, shape index: {}]   ;;  %s2245_s2 = inlined_call_operand.vmem [shape: f32[2,16,16,128], index: 2, kind: output, shape index: {}]  }
   0x1   :  { %s1482_s11 = smov 0   ;;  %s1484_s12 = smov 0  }
   0x2   :  { %s1486_s13 = smov 0  }
   0x3 LB: > { %s21_s14 = sadd.s32 1, %s1445_s11  ;;  %s24_s15 = sadd.s32 1, %s1449_s12  ;;  %s1453_s13 = sphi %s1486_s13, %s12_s13   ;;  %s1449_s12 = sphi %s1484_s12, %s2249_s12   ;;  %s1445_s11 = sphi %s1482_s11, %s2248_s11   ;;  %s1441_s10 = sphi %s1480_s10, %s2247_s10   ;;  %s1437_s9 = sphi %s1478_s9, %s2246_s9  }
   0x4   : > { %p22_p0 = scmp.ge.s32.totalorder %s21_s14, 2  ;;  %p1213_p1 = scmp.ge.s32.totalorder %s1453_s13, 1 }
   0x5   : > { %p126_p2 = scmp.lt.s32.totalorder %s1453_s13, 5 }
   0x6   : > { %s2251_s14 = smov (%p22_p0, %s21_s14), 0  ;;  %s2253_s15 = smov (!%p22_p0, %s24_s15), %s1449_s12 }
   0x7   : > { %p127_p3 = pnand %p1213_p1, %p126_p2  ;;  %p26_p4 = scmp.ge.s32.totalorder %s2253_s15, 2 }
   0x8   : > { %p153_p5 = scmp.lt.s32.totalorder (!%p127_p3), %s1441_s10, 1  ;;  %s1220_s16 = smul.u32 (!%p127_p3), 192, %s1437_s9 }
   0x9   : > { %s2255_s15 = smov (%p26_p4, %s2253_s15), 0  ;;  %130 = sbr.rel (%p127_p3) target bundleno = 600 (0x258), region = 28 }
   0xa   : > { %s1455_s22 = smov (!%p127_p3), 8   ;;  %s1456_s23 = smov (!%p127_p3), 16  }
   0xb   : > { %s1457_s24 = smov (!%p127_p3), 24   ;;  %s1458_s25 = smov (!%p127_p3), 32  }
   0xc   : > { %s1459_s26 = smov (!%p127_p3), 40   ;;  %s1460_s27 = smov (!%p127_p3), 48  }
   0xd   : > { %s1461_s28 = smov (!%p127_p3), 64   ;;  %s1462_s29 = smov (!%p127_p3), 56  }
   0xe   : > { %s2257_s10 = smov (!%p153_p5, %s1441_s10), 1  ;;  %vm834_vm0 = vcmask 64512   ;;  %vm851_vm1 = vcmask 130048   ;;  %vm868_vm2 = vcmask 195584   ;;  %vm885_vm3 = vcmask 261120  }
   0xf   : > { %s1366_s17 = smul.u32 432, %s2257_s10  ;;  %vm902_vm4 = vcmask 326656   ;;  %vm919_vm5 = vcmask 392192   ;;  %vm936_vm6 = vcmask 457728   ;;  %vm953_vm7 = vcmask 523264  }
  0x10   : > { %vm979_vm8 = vcmask 588800  }
  0x11   : > { %s157_s20 = scalar_lea.vmem %s2243_s0, %s1366_s17 }
  0x12   : > { %s1517_s21 = scalar_lea.vmem %s157_s20, %s1220_s16 }
  0x13   : > { %v1520_v0 = vld [vmem:[%s1517_s21 + $0x31] sm:$0xff]  ;;  %v1523_v1 = vld [vmem:[%s1517_s21 + $0x19] sm:$0xff]  ;;  %v188_v2 = vld [vmem:[%s1517_s21 + $0x1] sm:$0xff] }
  0x14   : > { %346 = vrot.lane.b32.xlu2 %v1520_v0, %s1455_s22  ;;  %342 = vrot.lane.b32.xlu1 %v1523_v1, %s1455_s22  ;;  %v1532_v3 = vld [vmem:[%s1517_s21 + $0x39] sm:$0xff]  ;;  %v1535_v4 = vld [vmem:[%s1517_s21 + $0x21] sm:$0xff] }
  0x15   : > { %338 = vrot.lane.b32.xlu0 %v188_v2, %s1455_s22  ;;  %v189_v5 = vld [vmem:[%s1517_s21 + $0x9] sm:$0xff]  ;;  %v1544_v6 = vld [vmem:[%s1517_s21 + $0x61] sm:$0xff]  ;;  %v1547_v7 = vld [vmem:[%s1517_s21 + $0x51] sm:$0xff] }
  0x16   : > { %v1550_v8 = vld [vmem:[%s1517_s21 + $0x49] sm:$0xff]  ;;  %v1559_v9 = vld [vmem:[%s1517_s21 + $0x81] sm:$0xff]  ;;  %v1562_v10 = vld [vmem:[%s1517_s21 + $0x79] sm:$0xff] }
  0x17   : > { %v1565_v11 = vld [vmem:[%s1517_s21 + $0x69] sm:$0xff]  ;;  %v1577_v13 = vld [vmem:[%s1517_s21 + $0x99] sm:$0xff]  ;;  %v1580_v14 = vld [vmem:[%s1517_s21 + $0x91] sm:$0xff] }
  0x18   : > { %v1574_v12 = vld [vmem:[%s1517_s21 + $0xa9] sm:$0xff]  ;;  %v1591_v17 = vld [vmem:[%s1517_s21 + $0xb1] sm:$0xff]  ;;  %v1604_v20 = vld [vmem:[%s1517_s21 + $0x1a] sm:$0xff] }
  0x19   : > { %v205_v15 = vld [vmem:[%s1517_s21 + $0xa] sm:$0xff]  ;;  %v204_v16 = vld [vmem:[%s1517_s21 + $0x2] sm:$0xff]  ;;  %v1598_v18 = vld [vmem:[%s1517_s21 + $0x32] sm:$0xff] }
  0x1a   : > { %v1601_v19 = vld [vmem:[%s1517_s21 + $0x22] sm:$0xff]  ;;  %v1613_v21 = vld [vmem:[%s1517_s21 + $0x52] sm:$0xff]  ;;  %v1616_v22 = vld [vmem:[%s1517_s21 + $0x4a] sm:$0xff] }
  0x1b   : > { %v1619_v23 = vld [vmem:[%s1517_s21 + $0x3a] sm:$0xff]  ;;  %v1631_v25 = vld [vmem:[%s1517_s21 + $0x6a] sm:$0xff]  ;;  %v1634_v26 = vld [vmem:[%s1517_s21 + $0x62] sm:$0xff] }
  0x1c   : > { %348 = vrot.lane.b32.xlu2 %v1532_v3, %s1455_s22  ;;  %344 = vrot.lane.b32.xlu1 %v1535_v4, %s1455_s22  ;;  %v1628_v24 = vld [vmem:[%s1517_s21 + $0x7a] sm:$0xff]  ;;  %v1646_v28 = vld [vmem:[%s1517_s21 + $0x92] sm:$0xff] }
  0x1d   : > { %340 = vrot.lane.b32.xlu0 %v189_v5, %s1455_s22  ;;  %v1643_v27 = vld [vmem:[%s1517_s21 + $0x9a] sm:$0xff]  ;;  %v1649_v29 = vld [vmem:[%s1517_s21 + $0x82] sm:$0xff]  ;;  %v1659_v31 = vld [vmem:[%s1517_s21 + $0xb2] sm:$0xff] }
  0x1e   : > { %v1223_v30 = vld [vmem:[%s1517_s21 + $0x18] sm:$0xff]  ;;  %v1662_v32 = vld [vmem:[%s1517_s21 + $0xaa] sm:$0xff]  ;;  %v1224_v35 = vld [vmem:[%s1517_s21 + $0x20] sm:$0xff] }
  0x1f   : > { %v1670_v33 = vld [vmem:[%s1517_s21 + $0x38] sm:$0xff]  ;;  %v1673_v34 = vld [vmem:[%s1517_s21 + $0x30] sm:$0xff]  ;;  %v1682_v37 = vld [vmem:[%s1517_s21 + $0x60] sm:$0xff] }
  0x20   : > { %v1685_v38 = vld [vmem:[%s1517_s21 + $0x50] sm:$0xff]  ;;  %v1688_v39 = vld [vmem:[%s1517_s21 + $0x48] sm:$0xff]  ;;  %v1699_v41 = vld [vmem:[%s1517_s21 + $0x80] sm:$0xff] }
  0x21   : > { %v1702_v42 = vld [vmem:[%s1517_s21 + $0x78] sm:$0xff]  ;;  %v1705_v43 = vld [vmem:[%s1517_s21 + $0x68] sm:$0xff]  ;;  %v1722_v47 = vld [vmem:[%s1517_s21 + $0x90] sm:$0xff] }
  0x22   : > { %v1716_v45 = vld [vmem:[%s1517_s21 + $0xa8] sm:$0xff]  ;;  %v1719_v46 = vld [vmem:[%s1517_s21 + $0x98] sm:$0xff]  ;;  %v1237_v53 = vld [vmem:[%s1517_s21 + $0xc0] sm:$0xff] }
  0x23   : > { %v1734_v52 = vld [vmem:[%s1517_s21 + $0xc8] sm:$0xff]  ;;  %v1738_v54 = vld [vmem:[%s1517_s21 + $0xb0] sm:$0xff] }
  0x24   : > { %354 = vrot.lane.b32.xlu2 %v1544_v6, %s1455_s22  ;;  %352 = vrot.lane.b32.xlu1 %v1547_v7, %s1455_s22  ;;  %v173_v59 = vld [vmem:[%s1517_s21 + $0x8] sm:$0xff] }
  0x25   : > { %350 = vrot.lane.b32.xlu0 %v1550_v8, %s1455_s22 }
  0x2c   : > { %360 = vrot.lane.b32.xlu2 %v1559_v9, %s1455_s22  ;;  %358 = vrot.lane.b32.xlu1 %v1562_v10, %s1455_s22 }
  0x2d   : > { %356 = vrot.lane.b32.xlu0 %v1565_v11, %s1455_s22 }
  0x34   : > { %366 = vrot.lane.b32.xlu2 %v1574_v12, %s1455_s22  ;;  %364 = vrot.lane.b32.xlu1 %v1577_v13, %s1455_s22 }
  0x35   : > { %362 = vrot.lane.b32.xlu0 %v1580_v14, %s1455_s22 }
  0x3c   : > { %404 = vrot.lane.b32.xlu2 %v205_v15, %s1456_s23  ;;  %402 = vrot.lane.b32.xlu1 %v204_v16, %s1456_s23 }
  0x3d   : > { %368 = vrot.lane.b32.xlu0 %v1591_v17, %s1455_s22 }
  0x44   : > { %410 = vrot.lane.b32.xlu2 %v1598_v18, %s1456_s23  ;;  %408 = vrot.lane.b32.xlu1 %v1601_v19, %s1456_s23 }
  0x45   : > { %406 = vrot.lane.b32.xlu0 %v1604_v20, %s1456_s23 }
  0x4c   : > { %416 = vrot.lane.b32.xlu2 %v1613_v21, %s1456_s23  ;;  %414 = vrot.lane.b32.xlu1 %v1616_v22, %s1456_s23 }
  0x4d   : > { %412 = vrot.lane.b32.xlu0 %v1619_v23, %s1456_s23 }
  0x54   : > { %422 = vrot.lane.b32.xlu2 %v1628_v24, %s1456_s23  ;;  %420 = vrot.lane.b32.xlu1 %v1631_v25, %s1456_s23 }
  0x55   : > { %418 = vrot.lane.b32.xlu0 %v1634_v26, %s1456_s23 }
  0x5c   : > { %428 = vrot.lane.b32.xlu2 %v1643_v27, %s1456_s23  ;;  %426 = vrot.lane.b32.xlu1 %v1646_v28, %s1456_s23 }
  0x5d   : > { %424 = vrot.lane.b32.xlu0 %v1649_v29, %s1456_s23 }
  0x64   : > { %466 = vrot.lane.b32.xlu2 %v1223_v30, %s1457_s24  ;;  %432 = vrot.lane.b32.xlu1 %v1659_v31, %s1456_s23 }
  0x65   : > { %430 = vrot.lane.b32.xlu0 %v1662_v32, %s1456_s23 }
  0x6c   : > { %472 = vrot.lane.b32.xlu2 %v1670_v33, %s1457_s24  ;;  %470 = vrot.lane.b32.xlu1 %v1673_v34, %s1457_s24 }
  0x6d   : > { %468 = vrot.lane.b32.xlu0 %v1224_v35, %s1457_s24 }
  0x6e   : > { %v347_v36 = vpop.permute.xlu2 %346 }
  0x74   : > { %478 = vrot.lane.b32.xlu2 %v1682_v37, %s1457_s24  ;;  %476 = vrot.lane.b32.xlu1 %v1685_v38, %s1457_s24 }
  0x75   : > { %474 = vrot.lane.b32.xlu0 %v1688_v39, %s1457_s24 }
  0x76   : > { %v1696_v40 = vpop.permute.xlu2 %348 }
  0x7c   : > { %484 = vrot.lane.b32.xlu2 %v1699_v41, %s1457_s24  ;;  %482 = vrot.lane.b32.xlu1 %v1702_v42, %s1457_s24 }
  0x7d   : > { %480 = vrot.lane.b32.xlu0 %v1705_v43, %s1457_s24 }
  0x7e   : > { %v1713_v44 = vpop.permute.xlu2 %354 }
  0x84   : > { %490 = vrot.lane.b32.xlu2 %v1716_v45, %s1457_s24  ;;  %488 = vrot.lane.b32.xlu1 %v1719_v46, %s1457_s24 }
  0x85   : > { %486 = vrot.lane.b32.xlu0 %v1722_v47, %s1457_s24 }
  0x86   : > { %v1730_v48 = vpop.permute.xlu2 %360  ;;  %v343_v49 = vpop.permute.xlu1 %342 }
  0x87   : > { %v837_v50 = vsel %vm834_vm0, %v1223_v30, %v343_v49  ;;  %v339_v51 = vpop.permute.xlu0 %338 }
  0x8c   : > { %496 = vrot.lane.b32.xlu2 %v1734_v52, %s1457_s24  ;;  %494 = vrot.lane.b32.xlu1 %v1237_v53, %s1457_s24 }
  0x8d   : > { %492 = vrot.lane.b32.xlu0 %v1738_v54, %s1457_s24 }
  0x8e   : > { %v1745_v55 = vpop.permute.xlu2 %366  ;;  %v345_v56 = vpop.permute.xlu1 %344 }
  0x8f   : > { %v838_v57 = vsel %vm834_vm0, %v1224_v35, %v345_v56  ;;  %v341_v58 = vpop.permute.xlu0 %340 }
  0x90   : > { %v836_v60 = vsel %vm834_vm0, %v173_v59, %v341_v58  ;;  %v172_v59 = vld [vmem:[%s1517_s21] sm:$0xff] }
  0x94   : > { %534 = vrot.lane.b32.xlu2 %v1520_v0, %s1458_s25  ;;  %532 = vrot.lane.b32.xlu1 %v1535_v4, %s1458_s25 }
  0x95   : > { %530 = vrot.lane.b32.xlu0 %v1523_v1, %s1458_s25  ;;  %v839_v1 = vsel %vm834_vm0, %v1673_v34, %v347_v36 }
  0x96   : > { %v405_v61 = vpop.permute.xlu2 %404  ;;  %v353_v62 = vpop.permute.xlu1 %352 }
  0x97   : > { %v1757_v63 = vsel %vm851_vm1, %v836_v60, %v405_v61  ;;  %v351_v2 = vpop.permute.xlu0 %350  ;;  %v842_v30 = vsel %vm834_vm0, %v1685_v38, %v353_v62  ;;  %v835_v60 = vsel %vm834_vm0, %v172_v59, %v339_v51 }
  0x9c   : > { %540 = vrot.lane.b32.xlu2 %v1547_v7, %s1458_s25  ;;  %538 = vrot.lane.b32.xlu1 %v1550_v8, %s1458_s25 }
  0x9d   : > { %536 = vrot.lane.b32.xlu0 %v1532_v3, %s1458_s25 }
  0x9e   : > { %v411_v4 = vpop.permute.xlu2 %410  ;;  %v359_v5 = vpop.permute.xlu1 %358 }
  0x9f   : > { %v1768_v15 = vsel %vm851_vm1, %v839_v1, %v411_v4  ;;  %v357_v16 = vpop.permute.xlu0 %356  ;;  %v845_v61 = vsel %vm834_vm0, %v1702_v42, %v359_v5 }
  0xa4   : > { %546 = vrot.lane.b32.xlu2 %v1562_v10, %s1458_s25  ;;  %544 = vrot.lane.b32.xlu1 %v1565_v11, %s1458_s25 }
  0xa5   : > { %542 = vrot.lane.b32.xlu0 %v1544_v6, %s1458_s25 }
  0xa6   : > { %v417_v35 = vpop.permute.xlu2 %416  ;;  %v365_v36 = vpop.permute.xlu1 %364 }
  0xa7   : > { %v1779_v49 = vsel %vm851_vm1, %v842_v30, %v417_v35  ;;  %v363_v56 = vpop.permute.xlu0 %362  ;;  %v848_v51 = vsel %vm834_vm0, %v1719_v46, %v365_v36  ;;  %v841_v36 = vsel %vm834_vm0, %v1688_v39, %v351_v2 }
  0xa8   : > { %v847_v58 = vsel %vm834_vm0, %v1722_v47, %v363_v56 }
  0xac   : > { %552 = vrot.lane.b32.xlu2 %v1577_v13, %s1458_s25  ;;  %550 = vrot.lane.b32.xlu1 %v1580_v14, %s1458_s25 }
  0xad   : > { %548 = vrot.lane.b32.xlu0 %v1559_v9, %s1458_s25 }
  0xae   : > { %v423_v62 = vpop.permute.xlu2 %422  ;;  %v403_v1 = vpop.permute.xlu1 %402 }
  0xaf   : > { %v1794_v4 = vsel %vm851_vm1, %v845_v61, %v423_v62  ;;  %v852_v30 = vsel %vm851_vm1, %v835_v60, %v403_v1  ;;  %v369_v35 = vpop.permute.xlu0 %368 }
  0xb4   : > { %610 = vrot.lane.b32.xlu2 %v1628_v24, %s1459_s26  ;;  %556 = vrot.lane.b32.xlu1 %v1591_v17, %s1458_s25 }
  0xb5   : > { %554 = vrot.lane.b32.xlu0 %v1574_v12, %s1458_s25 }
  0xb6   : > { %v429_v5 = vpop.permute.xlu2 %428  ;;  %v409_v56 = vpop.permute.xlu1 %408 }
  0xb7   : > { %v1806_v59 = vsel %vm851_vm1, %v848_v51, %v429_v5  ;;  %v855_v60 = vsel %vm851_vm1, %v838_v57, %v409_v56  ;;  %v407_v61 = vpop.permute.xlu0 %406  ;;  %v840_v57 = vsel %vm834_vm0, %v1670_v33, %v1696_v40  ;;  %v1826_v56 = vld [vmem:[%s1517_s21 + $0xc1] sm:$0xff]  ;;  %v844_v40 = vsel %vm834_vm0, %v1705_v43, %v357_v16 }
  0xb8   : > { %v854_v62 = vsel %vm851_vm1, %v837_v50, %v407_v61  ;;  %v843_v61 = vsel %vm834_vm0, %v1682_v37, %v1713_v44  ;;  %v846_v16 = vsel %vm834_vm0, %v1699_v41, %v1730_v48 }
  0xbc   : > { %682 = vrot.lane.b32.xlu2 %v1237_v53, %s1460_s27  ;;  %674 = vrot.lane.b32.xlu1 %v1722_v47, %s1460_s27 }
  0xbd   : > { %618 = vrot.lane.b32.xlu0 %v1662_v32, %s1459_s26 }
  0xbe   : > { %v467_v1 = vpop.permute.xlu2 %466  ;;  %v415_v51 = vpop.permute.xlu1 %414 }
  0xbf   : > { %v1821_v50 = vsel %vm868_vm2, %v852_v30, %v467_v1  ;;  %v858_v53 = vsel %vm851_vm1, %v841_v36, %v415_v51  ;;  %v413_v5 = vpop.permute.xlu0 %412 }
  0xc0   : > { %v857_v47 = vsel %vm851_vm1, %v840_v57, %v413_v5  ;;  %v1845_v5 = vld [vmem:[%s1517_s21 + $0xc2] sm:$0xff] }
  0xc4   : > { %802 = vrot.lane.b32.xlu2 %v1646_v28, %s1461_s28  ;;  %746 = vrot.lane.b32.xlu1 %v1826_v56, %s1462_s29 }
  0xc5   : > { %738 = vrot.lane.b32.xlu0 %v1580_v14, %s1462_s29 }
  0xc6   : > { %v473_v2 = vpop.permute.xlu2 %472  ;;  %v421_v30 = vpop.permute.xlu1 %420 }
  0xc7   : > { %v1840_v36 = vsel %vm868_vm2, %v855_v60, %v473_v2  ;;  %v861_v1 = vsel %vm851_vm1, %v844_v40, %v421_v30  ;;  %v419_v51 = vpop.permute.xlu0 %418 }
  0xc8   : > { %v860_v57 = vsel %vm851_vm1, %v843_v61, %v419_v51 }
  0xcc   : > { %602 = vrot.lane.b32.xlu2 %v1616_v22, %s1459_s26  ;;  %594 = vrot.lane.b32.xlu1 %v1604_v20, %s1459_s26  ;;  %v850_v20 = vsel %vm834_vm0, %v1738_v54, %v369_v35 }
  0xcd   : > { %810 = vrot.lane.b32.xlu0 %v1845_v5, %s1461_s28 }
  0xce   : > { %v479_v14 = vpop.permute.xlu2 %478  ;;  %v427_v44 = vpop.permute.xlu1 %426 }
  0xcf   : > { %v1857_v60 = vsel %vm868_vm2, %v858_v53, %v479_v14  ;;  %v864_v40 = vsel %vm851_vm1, %v847_v58, %v427_v44  ;;  %v425_v2 = vpop.permute.xlu0 %424  ;;  %v849_v58 = vsel %vm834_vm0, %v1716_v45, %v1745_v55 }
  0xd0   : > { %v863_v30 = vsel %vm851_vm1, %v846_v16, %v425_v2 }
  0xd4   : > { %612 = vrot.lane.b32.xlu2 %v1649_v29, %s1459_s26  ;;  %666 = vrot.lane.b32.xlu1 %v1682_v37, %s1460_s27 }
  0xd5   : > { %658 = vrot.lane.b32.xlu0 %v1673_v34, %s1460_s27 }
  0xd6   : > { %v485_v48 = vpop.permute.xlu2 %484  ;;  %v433_v53 = vpop.permute.xlu1 %432 }
  0xd7   : > { %v1873_v61 = vsel %vm868_vm2, %v861_v1, %v485_v48  ;;  %v867_v51 = vsel %vm851_vm1, %v850_v20, %v433_v53  ;;  %v431_v14 = vpop.permute.xlu0 %430  ;;  %v1902_v20 = vld [vmem:[%s1517_s21 + $0xc9] sm:$0xff] }
  0xd8   : > { %v866_v37 = vsel %vm851_vm1, %v849_v58, %v431_v14  ;;  %v1921_v58 = vld [vmem:[%s1517_s21 + $0xca] sm:$0xff] }
  0xdc   : > { %730 = vrot.lane.b32.xlu2 %v1544_v6, %s1462_s29  ;;  %722 = vrot.lane.b32.xlu1 %v1520_v0, %s1462_s29 }
  0xdd   : > { %620 = vrot.lane.b32.xlu0 %v1659_v31, %s1459_s26 }
  0xde   : > { %v491_v34 = vpop.permute.xlu2 %490  ;;  %v471_v55 = vpop.permute.xlu1 %470 }
  0xdf   : > { %v1884_v35 = vsel %vm868_vm2, %v864_v40, %v491_v34  ;;  %v871_v1 = vsel %vm868_vm2, %v854_v62, %v471_v55  ;;  %v469_v44 = vpop.permute.xlu0 %468 }
  0xe0   : > { %v870_v16 = vsel %vm868_vm2, %v1757_v63, %v469_v44 }
  0xe4   : > { %786 = vrot.lane.b32.xlu2 %v1598_v18, %s1461_s28  ;;  %684 = vrot.lane.b32.xlu1 %v1734_v52, %s1460_s27 }
  0xe5   : > { %676 = vrot.lane.b32.xlu0 %v1719_v46, %s1460_s27 }
  0xe6   : > { %v497_v0 = vpop.permute.xlu2 %496  ;;  %v477_v6 = vpop.permute.xlu1 %476 }
  0xe7   : > { %v1896_v40 = vsel %vm868_vm2, %v867_v51, %v497_v0  ;;  %v874_v62 = vsel %vm868_vm2, %v857_v47, %v477_v6  ;;  %v475_v2 = vpop.permute.xlu0 %474 }
  0xe8   : > { %v873_v63 = vsel %vm868_vm2, %v1768_v15, %v475_v2  ;;  %v973_v2 = vld [vmem:[%s2244_s1 + $0x18] sm:$0xff] }
  0xec   : > { %748 = vrot.lane.b32.xlu2 %v1902_v20, %s1462_s29  ;;  %740 = vrot.lane.b32.xlu1 %v1577_v13, %s1462_s29 }
  0xed   : > { %794 = vrot.lane.b32.xlu0 %v1634_v26, %s1461_s28 }
  0xee   : > { %v535_v46 = vpop.permute.xlu2 %534  ;;  %v483_v52 = vpop.permute.xlu1 %482 }
  0xef   : > { %v1911_v47 = vsel %vm885_vm3, %v871_v1, %v535_v46  ;;  %v1914_v48 = vsel %vm868_vm2, %v860_v57, %v483_v52  ;;  %v481_v15 = vpop.permute.xlu0 %480  ;;  %v972_v46 = vld [vmem:[%s2244_s1 + $0x10] sm:$0xff] }
  0xf0   : > { %v1918_v53 = vsel %vm868_vm2, %v1779_v49, %v481_v15 }
  0xf4   : > { %596 = vrot.lane.b32.xlu2 %v1601_v19, %s1459_s26  ;;  %812 = vrot.lane.b32.xlu1 %v1921_v58, %s1461_s28 }
  0xf5   : > { %804 = vrot.lane.b32.xlu0 %v1643_v27, %s1461_s28 }
  0xf6   : > { %v541_v13 = vpop.permute.xlu2 %540  ;;  %v489_v51 = vpop.permute.xlu1 %488 }
  0xf7   : > { %v1930_v57 = vsel %vm885_vm3, %v874_v62, %v541_v13  ;;  %v880_v14 = vsel %vm868_vm2, %v863_v30, %v489_v51  ;;  %v487_v49 = vpop.permute.xlu0 %486 }
  0xf8   : > { %v1935_v34 = vsel %vm868_vm2, %v1794_v4, %v487_v49  ;;  %v970_v49 = vld [vmem:[%s2244_s1] sm:$0xff] }
  0xfc   : > { %660 = vrot.lane.b32.xlu2 %v1670_v33, %s1460_s27  ;;  %558 = vrot.lane.b32.xlu1 %v1826_v56, %s1458_s25 }
  0xfd   : > { %604 = vrot.lane.b32.xlu0 %v1613_v21, %s1459_s26 }
  0xfe   : > { %v1943_v19 = vpop.permute.xlu2 %546  ;;  %v495_v55 = vpop.permute.xlu1 %494 }
  0xff   : > { %v1946_v1 = vsel %vm868_vm2, %v866_v37, %v495_v55  ;;  %v493_v30 = vpop.permute.xlu0 %492  ;;  %v1303_v55 = vld [vmem:[%s1517_s21 + $0xd9] sm:$0xff] }
 0x100   : > { %v1950_v4 = vsel %vm868_vm2, %v1806_v59, %v493_v30 }
 0x104   : > { %622 = vrot.lane.b32.xlu2 %v1845_v5, %s1459_s26  ;;  %614 = vrot.lane.b32.xlu1 %v1646_v28, %s1459_s26  ;;  %v978_v28 = vld [vmem:[%s2244_s1 + $0x40] sm:$0xff]  ;;  %v976_v5 = vld [vmem:[%s2244_s1 + $0x30] sm:$0xff] }
 0x105   : > { %668 = vrot.lane.b32.xlu0 %v1705_v43, %s1460_s27  ;;  %v977_v43 = vld [vmem:[%s2244_s1 + $0x38] sm:$0xff]  ;;  %1340 = vmatpush.msra.mxu2 %v978_v28 }
 0x106   : > { %v553_v33 = vpop.permute.xlu2 %552  ;;  %v533_v56 = vpop.permute.xlu1 %532  ;;  %1341 = vmatpush.msra.mxu3 %v978_v28  ;;  %1035 = vmatpush.msra.mxu0 %v978_v28 }
 0x107   : > { %v1959_v44 = vsel %vm885_vm3, %v880_v14, %v553_v33  ;;  %v1962_v37 = vsel %vm885_vm3, %v870_v16, %v533_v56  ;;  %v531_v0 = vpop.permute.xlu0 %530  ;;  %1339 = vmatpush.msra.mxu1 %v978_v28  ;;  %1343 = vmatpush.msra.mxu2 %v977_v43 }
 0x108   : > { %v1966_v59 = vsel %vm885_vm3, %v1821_v50, %v531_v0  ;;  %1344 = vmatpush.msra.mxu3 %v977_v43  ;;  %v975_v50 = vld [vmem:[%s2244_s1 + $0x28] sm:$0xff]  ;;  %1036 = vmatpush.msra.mxu0 %v977_v43 }
 0x109   : > { %1346 = vmatpush.msra.mxu2 %v976_v5  ;;  %1342 = vmatpush.msra.mxu1 %v977_v43 }
 0x10a   : > { %1347 = vmatpush.msra.mxu3 %v976_v5  ;;  %1037 = vmatpush.msra.mxu0 %v976_v5 }
 0x10b   : > { %1349 = vmatpush.msra.mxu2 %v975_v50  ;;  %1345 = vmatpush.msra.mxu1 %v976_v5 }
 0x10c   : > { %678 = vrot.lane.b32.xlu2 %v1716_v45, %s1460_s27  ;;  %732 = vrot.lane.b32.xlu1 %v1565_v11, %s1462_s29  ;;  %v974_v11 = vld [vmem:[%s2244_s1 + $0x20] sm:$0xff] }
 0x10d   : > { %724 = vrot.lane.b32.xlu0 %v1532_v3, %s1462_s29  ;;  %1350 = vmatpush.msra.mxu3 %v975_v50 }
 0x10e   : > { %v1986_v16 = vpop.permute.xlu2 %610  ;;  %v539_v6 = vpop.permute.xlu1 %538  ;;  %1352 = vmatpush.msra.mxu2 %v974_v11  ;;  %1038 = vmatpush.msra.mxu0 %v975_v50 }
 0x10f   : > { %v1989_v62 = vsel %vm885_vm3, %v873_v63, %v539_v6  ;;  %v537_v45 = vpop.permute.xlu0 %536  ;;  %v1287_v63 = vld [vmem:[%s1517_s21 + $0xd8] sm:$0xff]  ;;  %1353 = vmatpush.msra.mxu3 %v974_v11  ;;  %1348 = vmatpush.msra.mxu1 %v975_v50  ;;  %v1288_v50 = vld [vmem:[%s1517_s21 + $0xe0] sm:$0xff] }
 0x110   : > { %v1993_v3 = vsel %vm885_vm3, %v1840_v36, %v537_v45  ;;  %1355 = vmatpush.msra.mxu2 %v973_v2  ;;  %v971_v36 = vld [vmem:[%s2244_s1 + $0x8] sm:$0xff]  ;;  %1039 = vmatpush.msra.mxu0 %v974_v11 }
 0x111   : > { %1356 = vmatpush.msra.mxu3 %v973_v2  ;;  %1351 = vmatpush.msra.mxu1 %v974_v11 }
 0x112   : > { %1358 = vmatpush.msra.mxu2 %v972_v46  ;;  %1040 = vmatpush.msra.mxu0 %v973_v2 }
 0x113   : > { %1359 = vmatpush.msra.mxu3 %v972_v46  ;;  %1354 = vmatpush.msra.mxu1 %v973_v2  ;;  %v1320_v2 = vld [vmem:[%s1517_s21 + $0xe2] sm:$0xff] }
 0x114   : > { %796 = vrot.lane.b32.xlu2 %v1631_v25, %s1461_s28  ;;  %788 = vrot.lane.b32.xlu1 %v1619_v23, %s1461_s28 }
 0x115   : > { %686 = vrot.lane.b32.xlu0 %v1287_v63, %s1460_s27  ;;  %1361 = vmatpush.msra.mxu2 %v971_v36 }
 0x116   : > { %v2013_v52 = vpop.permute.xlu2 %682  ;;  %v545_v15 = vpop.permute.xlu1 %544  ;;  %1362 = vmatpush.msra.mxu3 %v971_v36  ;;  %1041 = vmatpush.msra.mxu0 %v972_v46 }
 0x117   : > { %v2017_v13 = vsel %vm885_vm3, %v1918_v53, %v545_v15  ;;  %v543_v51 = vpop.permute.xlu0 %542  ;;  %1364 = vmatpush.msra.mxu2 %v970_v49  ;;  %1357 = vmatpush.msra.mxu1 %v972_v46  ;;  %v1304_v46 = vld [vmem:[%s1517_s21 + $0xe1] sm:$0xff] }
 0x118   : > { %v2021_v14 = vsel %vm885_vm3, %v1857_v60, %v543_v51  ;;  %1365 = vmatpush.msra.mxu3 %v970_v49  ;;  %1042 = vmatpush.msra.mxu0 %v971_v36 }
 0x119   : > { %1360 = vmatpush.msra.mxu1 %v971_v36 }
 0x11a   : > { %1043 = vmatpush.msra.mxu0 %v970_v49 }
 0x11b   : > { %1363 = vmatpush.msra.mxu1 %v970_v49 }
 0x11c   : > { %806 = vrot.lane.b32.xlu2 %v1662_v32, %s1461_s28  ;;  %750 = vrot.lane.b32.xlu1 %v1303_v55, %s1462_s29  ;;  %v1319_v32 = vld [vmem:[%s1517_s21 + $0xda] sm:$0xff]  ;;  %s1215_s21 = sshll.u32 %s1437_s9, 3 }
 0x11d   : > { %742 = vrot.lane.b32.xlu0 %v1574_v12, %s1462_s29  ;;  %p161_p6 = scmp.lt.s32.totalorder %s1215_s21, 15 }
 0x11e   : > { %v803_v60 = vpop.permute.xlu2 %802  ;;  %v551_v53 = vpop.permute.xlu1 %550 }
 0x11f   : > { %v2034_v30 = vsel %vm885_vm3, %v1935_v34, %v551_v53  ;;  %v549_v33 = vpop.permute.xlu0 %548  ;;  %s2259_s21 = smov (!%p161_p6, %s1215_s21), 15 }
 0x120   : > { %v2038_v56 = vsel %vm885_vm3, %v1873_v61, %v549_v33 }
 0x124   : > { %606 = vrot.lane.b32.xlu2 %v1634_v26, %s1459_s26  ;;  %598 = vrot.lane.b32.xlu1 %v1598_v18, %s1459_s26 }
 0x125   : > { %814 = vrot.lane.b32.xlu0 %v1319_v32, %s1461_s28 }
 0x126   : > { %v2046_v12 = vpop.permute.xlu2 %602  ;;  %v2048_v34 = vpop.permute.xlu1 %556 }
 0x127   : > { %v555_v0 = vpop.permute.xlu0 %554  ;;  %v907_v49 = vsel %vm902_vm4, %v1989_v62, %v2046_v12  ;;  %v899_v62 = vsel %vm885_vm3, %v1950_v4, %v2048_v34 }
 0x12c   : > { %670 = vrot.lane.b32.xlu2 %v1702_v42, %s1460_s27  ;;  %662 = vrot.lane.b32.xlu1 %v1688_v39, %s1460_s27  ;;  %v894_v39 = vsel %vm885_vm3, %v1914_v48, %v1943_v19  ;;  %v898_v48 = vsel %vm885_vm3, %v1884_v35, %v555_v0 }
 0x12d   : > { %560 = vrot.lane.b32.xlu0 %v1902_v20, %s1458_s25  ;;  %v911_v42 = vsel %vm902_vm4, %v894_v39, %v1986_v16  ;;  %s1216_s25 = sshll.u32 %s2259_s21, 1 }
 0x12e   : > { %v2056_v26 = vpop.permute.xlu2 %612  ;;  %v675_v61 = vpop.permute.xlu1 %674 }
 0x12f   : > { %v619_v18 = vpop.permute.xlu0 %618  ;;  %v928_v43 = vsel %vm919_vm5, %v911_v42, %v675_v61 }
 0x134   : > { %624 = vrot.lane.b32.xlu1 %v1921_v58, %s1459_s26  ;;  %726 = vrot.lane.b32.xlu2 %v1550_v8, %s1462_s29 }
 0x135   : > { %616 = vrot.lane.b32.xlu0 %v1643_v27, %s1459_s26  ;;  %v915_v27 = vsel %vm902_vm4, %v898_v48, %v619_v18 }
 0x136   : > { %v731_v20 = vpop.permute.xlu2 %730  ;;  %v747_v28 = vpop.permute.xlu1 %746  ;;  %v932_v19 = vsel %vm919_vm5, %v915_v27, %v2013_v52 }
 0x137   : > { %v739_v58 = vpop.permute.xlu0 %738  ;;  %v949_v35 = vsel %vm936_vm6, %v932_v19, %v747_v28 }
 0x138   : > { %v945_v8 = vsel %vm936_vm6, %v928_v43, %v739_v58 }
 0x139   : > { %v962_v5 = vsel %vm953_vm7, %v945_v8, %v803_v60 }
 0x13a   : > { %1329 = vmatmul.msk.f32.vlgmr.msra.gmra.mxu2 %vm979_vm8, %v962_v5 }
 0x13c   : > { %680 = vrot.lane.b32.xlu1 %v1738_v54, %s1460_s27  ;;  %688 = vrot.lane.b32.xlu2 %v1288_v50, %s1460_s27 }
 0x13d   : > { %734 = vrot.lane.b32.xlu0 %v1562_v10, %s1462_s29 }
 0x13e   : > { %v595_v16 = vpop.permute.xlu1 %594  ;;  %v787_v45 = vpop.permute.xlu2 %786 }
 0x13f   : > { %v811_v6 = vpop.permute.xlu0 %810  ;;  %v903_v36 = vsel %vm902_vm4, %v1966_v59, %v595_v16 }
 0x140   : > { %v966_v11 = vsel %vm953_vm7, %v949_v35, %v811_v6 }
 0x141   : > { %1333 = vmatmul.msk.f32.vlgmr.msra.gmra.mxu3 %vm979_vm8, %v966_v11 }
 0x144   : > { %798 = vrot.lane.b32.xlu1 %v1628_v24, %s1461_s28  ;;  %744 = vrot.lane.b32.xlu2 %v1591_v17, %s1462_s29 }
 0x145   : > { %790 = vrot.lane.b32.xlu0 %v1616_v22, %s1461_s28 }
 0x146   : > { %v667_v10 = vpop.permute.xlu1 %666  ;;  %v749_v63 = vpop.permute.xlu2 %748 }
 0x147   : > { %v659_v54 = vpop.permute.xlu0 %658  ;;  %v924_v55 = vsel %vm919_vm5, %v907_v49, %v667_v10 }
 0x148   : > { %v920_v17 = vsel %vm919_vm5, %v903_v36, %v659_v54  ;;  %v941_v60 = vsel %vm936_vm6, %v924_v55, %v731_v20 }
 0x14c   : > { %808 = vrot.lane.b32.xlu1 %v1659_v31, %s1461_s28  ;;  %816 = vrot.lane.b32.xlu2 %v1320_v2, %s1461_s28 }
 0x14d   : > { %752 = vrot.lane.b32.xlu0 %v1304_v46, %s1462_s29 }
 0x14e   : > { %v723_v24 = vpop.permute.xlu1 %722  ;;  %v597_v51 = vpop.permute.xlu2 %596 }
 0x14f   : > { %v937_v22 = vsel %vm936_vm6, %v920_v17, %v723_v24  ;;  %v621_v52 = vpop.permute.xlu0 %620  ;;  %v904_v50 = vsel %vm902_vm4, %v1962_v37, %v597_v51 }
 0x150   : > { %v954_v15 = vsel %vm953_vm7, %v937_v22, %v787_v45 }
 0x151   : > { %1321 = vmatmul.msk.f32.vlgmr.msra.gmra.mxu0 %vm979_vm8, %v954_v15 }
 0x154   : > { %608 = vrot.lane.b32.xlu1 %v1631_v25, %s1459_s26  ;;  %664 = vrot.lane.b32.xlu2 %v1685_v38, %s1460_s27 }
 0x155   : > { %600 = vrot.lane.b32.xlu0 %v1619_v23, %s1459_s26  ;;  %s1217_s26 = sshll.u32 %s2257_s10, 5 }
 0x156   : > { %v685_v31 = vpop.permute.xlu1 %684  ;;  %v661_v25 = vpop.permute.xlu2 %660 }
 0x157   : > { %v677_v59 = vpop.permute.xlu0 %676  ;;  %v921_v48 = vsel %vm919_vm5, %v904_v50, %v661_v25 }
 0x15c   : > { %728 = vrot.lane.b32.xlu1 %v1547_v7, %s1462_s29  ;;  %736 = vrot.lane.b32.xlu2 %v1559_v9, %s1462_s29  ;;  %v916_v7 = vsel %vm902_vm4, %v899_v62, %v621_v52 }
 0x15d   : > { %672 = vrot.lane.b32.xlu0 %v1699_v41, %s1460_s27  ;;  %v933_v9 = vsel %vm919_vm5, %v916_v7, %v685_v31  ;;  %v912_v41 = vsel %vm902_vm4, %v2038_v56, %v2056_v26  ;;  %s165_s27 = sadd.s32 %s1217_s26, %s1216_s25 }
 0x15e   : > { %v741_v38 = vpop.permute.xlu1 %740  ;;  %v929_v33 = vsel %vm919_vm5, %v912_v41, %v677_v59  ;;  %v950_v4 = vsel %vm936_vm6, %v933_v9, %v749_v63  ;;  %v623_v61 = vpop.permute.xlu2 %622  ;;  %s1218_s9 = sshll.u32 %s165_s27, 3 }
 0x15f   : > { %v795_v23 = vpop.permute.xlu0 %794  ;;  %v946_v12 = vsel %vm936_vm6, %v929_v33, %v741_v38  ;;  %s2190_s29 = scalar_lea.vmem %s2245_s2, %s1218_s9 }
 0x160   : > { %v958_v53 = vsel %vm953_vm7, %v941_v60, %v795_v23 }
 0x161   : > { %1325 = vmatmul.msk.f32.vlgmr.msra.gmra.mxu1 %vm979_vm8, %v958_v53 }
 0x164   : > { %800 = vrot.lane.b32.xlu1 %v1649_v29, %s1461_s28 }
 0x165   : > { %792 = vrot.lane.b32.xlu0 %v1613_v21, %s1461_s28 }
 0x166   : > { %v813_v32 = vpop.permute.xlu1 %812  ;;  %v679_v21 = vpop.permute.xlu2 %678 }
 0x167   : > { %v805_v34 = vpop.permute.xlu0 %804  ;;  %v967_v0 = vsel %vm953_vm7, %v950_v4, %v813_v32 }
 0x168   : > { %v963_v29 = vsel %vm953_vm7, %v946_v12, %v805_v34  ;;  %1334 = vmatmul.msk.f32.gmra.mxu3 %vm979_vm8, %v967_v0 }
 0x169   : > { %1330 = vmatmul.msk.f32.gmra.mxu2 %vm979_vm8, %v963_v29 }
 0x16e   : > { %v559_v56 = vpop.permute.xlu1 %558  ;;  %v797_v42 = vpop.permute.xlu2 %796 }
 0x16f   : > { %v605_v26 = vpop.permute.xlu0 %604  ;;  %v900_v63 = vsel %vm885_vm3, %v1946_v1, %v559_v56 }
 0x170   : > { %v908_v20 = vsel %vm902_vm4, %v1930_v57, %v605_v26  ;;  %v917_v46 = vsel %vm902_vm4, %v900_v63, %v623_v61 }
 0x176   : > { %v615_v18 = vpop.permute.xlu1 %614  ;;  %v807_v27 = vpop.permute.xlu2 %806 }
 0x177   : > { %v669_v39 = vpop.permute.xlu0 %668  ;;  %v913_v6 = vsel %vm902_vm4, %v2034_v30, %v615_v18 }
 0x178   : > { %v925_v28 = vsel %vm919_vm5, %v908_v20, %v669_v39  ;;  %v930_v10 = vsel %vm919_vm5, %v913_v6, %v679_v21 }
 0x17e   : > { %v733_v43 = vpop.permute.xlu1 %732  ;;  %v607_v54 = vpop.permute.xlu2 %606 }
 0x17f   : > { %v942_v58 = vsel %vm936_vm6, %v925_v28, %v733_v43  ;;  %v725_v8 = vpop.permute.xlu0 %724  ;;  %v909_v23 = vsel %vm902_vm4, %v2021_v14, %v607_v54 }
 0x180   : > { %v959_v5 = vsel %vm953_vm7, %v942_v58, %v797_v42  ;;  %v938_v19 = vsel %vm936_vm6, %v921_v48, %v725_v8 }
 0x181   : > { %1326 = vmatmul.msk.f32.gmra.mxu1 %vm979_vm8, %v959_v5 }
 0x186   : > { %v789_v16 = vpop.permute.xlu1 %788  ;;  %v671_v52 = vpop.permute.xlu2 %670 }
 0x187   : > { %v687_v57 = vpop.permute.xlu0 %686  ;;  %v955_v35 = vsel %vm953_vm7, %v938_v19, %v789_v16  ;;  %v926_v53 = vsel %vm919_vm5, %v909_v23, %v671_v52 }
 0x188   : > { %1322 = vmatmul.msk.f32.gmra.mxu0 %vm979_vm8, %v955_v35  ;;  %v934_v36 = vsel %vm919_vm5, %v917_v46, %v687_v57 }
 0x18e   : > { %v751_v45 = vpop.permute.xlu1 %750  ;;  %v727_v31 = vpop.permute.xlu2 %726 }
 0x18f   : > { %v743_v11 = vpop.permute.xlu0 %742  ;;  %v951_v17 = vsel %vm936_vm6, %v934_v36, %v751_v45 }
 0x190   : > { %v947_v37 = vsel %vm936_vm6, %v930_v10, %v743_v11 }
 0x191   : > { %v964_v2 = vsel %vm953_vm7, %v947_v37, %v807_v27 }
 0x192   : > { %1331 = vmatmul.msk.f32.gmra.mxu2 %vm979_vm8, %v964_v2 }
 0x196   : > { %v599_v30 = vpop.permute.xlu1 %598  ;;  %v689_v49 = vpop.permute.xlu2 %688 }
 0x197   : > { %v815_v24 = vpop.permute.xlu0 %814  ;;  %v905_v38 = vsel %vm902_vm4, %v1911_v47, %v599_v30 }
 0x198   : > { %v968_v22 = vsel %vm953_vm7, %v951_v17, %v815_v24 }
 0x199   : > { %1335 = vmatmul.msk.f32.gmra.mxu3 %vm979_vm8, %v968_v22 }
 0x19e   : > { %v663_v15 = vpop.permute.xlu1 %662  ;;  %v745_v7 = vpop.permute.xlu2 %744 }
 0x19f   : > { %v561_v51 = vpop.permute.xlu0 %560  ;;  %v922_v60 = vsel %vm919_vm5, %v905_v38, %v663_v15 }
 0x1a0   : > { %v939_v41 = vsel %vm936_vm6, %v922_v60, %v727_v31  ;;  %v901_v14 = vsel %vm885_vm3, %v1896_v40, %v561_v51 }
 0x1a6   : > { %v625_v1 = vpop.permute.xlu1 %624 }
 0x1a7   : > { %v617_v59 = vpop.permute.xlu0 %616  ;;  %v918_v34 = vsel %vm902_vm4, %v901_v14, %v625_v1 }
 0x1a8   : > { %v914_v47 = vsel %vm902_vm4, %v1959_v44, %v617_v59  ;;  %v817_v44 = vpop.permute.xlu2 %816  ;;  %v935_v40 = vsel %vm919_vm5, %v918_v34, %v689_v49 }
 0x1ae   : > { %v681_v55 = vpop.permute.xlu1 %680 }
 0x1af   : > { %v735_v25 = vpop.permute.xlu0 %734  ;;  %v931_v12 = vsel %vm919_vm5, %v914_v47, %v681_v55 }
 0x1b0   : > { %v943_v62 = vsel %vm936_vm6, %v926_v53, %v735_v25  ;;  %v948_v61 = vsel %vm936_vm6, %v931_v12, %v745_v7  ;;  %v665_v28 = vpop.permute.xlu2 %664 }
 0x1b6   : > { %v799_v9 = vpop.permute.xlu1 %798 }
 0x1b7   : > { %v791_v33 = vpop.permute.xlu0 %790  ;;  %v960_v32 = vsel %vm953_vm7, %v943_v62, %v799_v9 }
 0x1b8   : > { %v956_v4 = vsel %vm953_vm7, %v939_v41, %v791_v33  ;;  %1327 = vmatmul.msk.f32.gmra.mxu1 %vm979_vm8, %v960_v32  ;;  %v737_v27 = vpop.permute.xlu2 %736 }
 0x1b9   : > { %1323 = vmatmul.msk.f32.gmra.mxu0 %vm979_vm8, %v956_v4 }
 0x1bd   : > { %v1069_v0 = vpop.f32.mrf.mxu2 }
 0x1be   : > { %1101 = vst [vmem:[%s2190_s29 + $0x40] sm:$0xff] %v1069_v0  ;;  %v809_v29 = vpop.permute.xlu1 %808 }
 0x1bf   : > { %v753_v56 = vpop.permute.xlu0 %752  ;;  %v965_v26 = vsel %vm953_vm7, %v948_v61, %v809_v29 }
 0x1c0   : > { %v952_v21 = vsel %vm936_vm6, %v935_v40, %v753_v56  ;;  %1332 = vmatmul.msk.f32.gmra.mxu2 %vm979_vm8, %v965_v26 }
 0x1c1   : > { %v969_v18 = vsel %vm953_vm7, %v952_v21, %v817_v44 }
 0x1c2   : > { %1336 = vmatmul.msk.f32.gmra.mxu3 %vm979_vm8, %v969_v18 }
 0x1c4   : > { %v1081_v39 = vpop.f32.mrf.mxu3 }
 0x1c5   : > { %1105 = vst [vmem:[%s2190_s29 + $0x60] sm:$0xff] %v1081_v39 }
 0x1c6   : > { %v609_v42 = vpop.permute.xlu1 %608 }
 0x1c7   : > { %v601_v20 = vpop.permute.xlu0 %600  ;;  %v910_v5 = vsel %vm902_vm4, %v2017_v13, %v609_v42 }
 0x1c8   : > { %v906_v50 = vsel %vm902_vm4, %v1993_v3, %v601_v20 }
 0x1c9   : > { %v923_v19 = vsel %vm919_vm5, %v906_v50, %v665_v28 }
 0x1ce   : > { %v729_v43 = vpop.permute.xlu1 %728  ;;  %v1045_v58 = vpop.f32.mrf.mxu0 }
 0x1cf   : > { %v673_v8 = vpop.permute.xlu0 %672  ;;  %1093 = vst [vmem:[%s2190_s29] sm:$0xff] %v1045_v58  ;;  %v940_v35 = vsel %vm936_vm6, %v923_v19, %v729_v43 }
 0x1d0   : > { %v927_v48 = vsel %vm919_vm5, %v910_v5, %v673_v8 }
 0x1d1   : > { %v944_v16 = vsel %vm936_vm6, %v927_v48, %v737_v27 }
 0x1d6   : > { %v801_v57 = vpop.permute.xlu1 %800 }
 0x1d7   : > { %v793_v6 = vpop.permute.xlu0 %792  ;;  %v961_v13 = vsel %vm953_vm7, %v944_v16, %v801_v57 }
 0x1d8   : > { %v957_v3 = vsel %vm953_vm7, %v940_v35, %v793_v6  ;;  %1328 = vmatmul.msk.f32.gmra.mxu1 %vm979_vm8, %v961_v13 }
 0x1d9   : > { %1324 = vmatmul.msk.f32.gmra.mxu0 %vm979_vm8, %v957_v3 }
 0x1de   : > { %v1057_v45 = vpop.f32.mrf.mxu1 }
 0x1df   : > { %1097 = vst [vmem:[%s2190_s29 + $0x20] sm:$0xff] %v1057_v45 }
 0x1eb   : > { %v1084_v11 = vpop.f32.mrf.mxu3 }
 0x1ec   : > { %v1072_v10 = vpop.f32.mrf.mxu2  ;;  %1106 = vst [vmem:[%s2190_s29 + $0x68] sm:$0xff] %v1084_v11 }
 0x1ed   : > { %1102 = vst [vmem:[%s2190_s29 + $0x48] sm:$0xff] %v1072_v10 }
 0x1fe   : > { %v1060_v54 = vpop.f32.mrf.mxu1 }
 0x1ff   : > { %1098 = vst [vmem:[%s2190_s29 + $0x28] sm:$0xff] %v1060_v54 }
 0x205   : > { %v1048_v37 = vpop.f32.mrf.mxu0 }
 0x206   : > { %1094 = vst [vmem:[%s2190_s29 + $0x8] sm:$0xff] %v1048_v37 }
 0x215   : > { %v1075_v2 = vpop.f32.mrf.mxu2 }
 0x216   : > { %1103 = vst [vmem:[%s2190_s29 + $0x50] sm:$0xff] %v1075_v2 }
 0x21c   : > { %v1087_v63 = vpop.f32.mrf.mxu3 }
 0x21d   : > { %1107 = vst [vmem:[%s2190_s29 + $0x70] sm:$0xff] %v1087_v63 }
 0x235   : > { %v1063_v46 = vpop.f32.mrf.mxu1 }
 0x236   : > { %v1051_v36 = vpop.f32.mrf.mxu0  ;;  %1099 = vst [vmem:[%s2190_s29 + $0x30] sm:$0xff] %v1063_v46 }
 0x237   : > { %1095 = vst [vmem:[%s2190_s29 + $0x10] sm:$0xff] %v1051_v36 }
 0x243   : > { %v1078_v30 = vpop.f32.mrf.mxu2 }
 0x244   : > { %1104 = vst [vmem:[%s2190_s29 + $0x58] sm:$0xff] %v1078_v30 }
 0x245   : > { %v1090_v17 = vpop.f32.mrf.mxu3 }
 0x246   : > { %1108 = vst [vmem:[%s2190_s29 + $0x78] sm:$0xff] %v1090_v17 }
 0x255   : > { %v1066_v24 = vpop.f32.mrf.mxu1 }
 0x256   : > { %v1054_v22 = vpop.f32.mrf.mxu0  ;;  %1100 = vst [vmem:[%s2190_s29 + $0x38] sm:$0xff] %v1066_v24 }
 0x257   : > { %1096 = vst [vmem:[%s2190_s29 + $0x18] sm:$0xff] %v1054_v22 }
 0x258 PF: > { %s12_s13 = sadd.s32 1, %s1453_s13   ;;  %s2246_s9 = smov %s1445_s11 }
 0x259   : > { %p9_p7 = scmp.ge.s32.totalorder %s12_s13, 6   ;;  %s2247_s10 = smov %s1449_s12 }
 0x25a   : > { %s2248_s11 = smov %s2251_s14  ;;  %s2249_s12 = smov %s2255_s15 }
 0x25b   :  { %11 = sbr.rel (!%p9_p7) target bundleno = 3 (0x3), region = 61 }

</bundles_post_ra>
